<compile_context>
chip_gen: v7x
topology: tpu7x:2x2x1
jax: 0.10.0
libtpu: 0.0.40
codegen_flags: <defaults>
</compile_context>

<pallas_src>
import math
from functools import partial

import jax
import jax.numpy as jnp
from jax.experimental import pallas as pl
from jax.experimental.pallas import tpu as pltpu

NEG_MASK = -10000.0            # additive mask value used by the PyTorch module
_VMEM_LIMIT = 48 * 1024 * 1024  # explicit scoped-VMEM budget (safe on v5e/v6e/v7x)


def _cparams(dims):
    return pltpu.CompilerParams(dimension_semantics=dims,
                                vmem_limit_bytes=_VMEM_LIMIT)


def _pick_tile(n, target, mult):
    """Largest divisor of n that is <= target and a multiple of `mult`, else n."""
    if n <= target:
        return n
    for c in range(target, mult - 1, -1):
        if n % c == 0 and c % mult == 0:
            return c
    return n


# ----------------------------- Pallas kernels -------------------------------

def _embed_kernel(x_ref, pe_ref, w_ref, g_ref, b_ref, o_ref, *, eps):
    # fused: sinusoidal PE add -> input_layer (no bias) -> LayerNorm(eps=1e-6)
    x = x_ref[0] + pe_ref[...]                                        # (T, H) f32
    h = jnp.dot(x.astype(jnp.bfloat16), w_ref[...].astype(jnp.bfloat16),
                preferred_element_type=jnp.float32)
    mu = jnp.mean(h, axis=-1, keepdims=True)
    var = jnp.mean(jnp.square(h - mu), axis=-1, keepdims=True)
    o_ref[0] = (h - mu) * jax.lax.rsqrt(var + eps) * g_ref[...] + b_ref[...]


def embed(trg_embed, pe, w_in, g, b, *, eps=1e-6):
    B, T, H = trg_embed.shape
    return pl.pallas_call(
        partial(_embed_kernel, eps=eps),
        out_shape=jax.ShapeDtypeStruct((B, T, H), jnp.float32),
        grid=(B,),
        in_specs=[pl.BlockSpec((1, T, H), lambda i: (i, 0, 0)),
                  pl.BlockSpec((T, H), lambda i: (0, 0)),
                  pl.BlockSpec((H, H), lambda i: (0, 0)),
                  pl.BlockSpec((1, H), lambda i: (0, 0)),
                  pl.BlockSpec((1, H), lambda i: (0, 0))],
        out_specs=pl.BlockSpec((1, T, H), lambda i: (i, 0, 0)),
        compiler_params=_cparams(("parallel",)),
    )(trg_embed, pe, w_in, g.reshape(1, H), b.reshape(1, H))


def _fused_attn_kernel(pad_ref, x_ref, kv_ref, wq_ref, bq_ref, wk_ref, bk_ref,
                       wv_ref, bv_ref, wo_ref, bo_ref, g_ref, beta_ref,
                       o_ref, acc_ref, *, causal, scale, eps):
    """One (batch, head) step of a full BERT attention block.

    grid = (B, nh); head axis is a reduction: the per-head output-projection
    contributions are accumulated into acc_ref (T, H) and the residual +
    LayerNorm finalize runs on the last head.
    """
    h = pl.program_id(1)

    @pl.when(h == 0)
    def _init():
        acc_ref[...] = jnp.zeros_like(acc_ref)

    x = x_ref[0]                                  # (T, H) f32 (query side / residual)
    kv = kv_ref[0]                                # (S, H) f32 (key/value source)
    xb = x.astype(jnp.bfloat16)
    kvb = kv.astype(jnp.bfloat16)

    q = jnp.dot(xb, wq_ref[0].astype(jnp.bfloat16),
                preferred_element_type=jnp.float32) + bq_ref[0]       # (T, hd)
    k = jnp.dot(kvb, wk_ref[0].astype(jnp.bfloat16),
                preferred_element_type=jnp.float32) + bk_ref[0]       # (S, hd)
    v = jnp.dot(kvb, wv_ref[0].astype(jnp.bfloat16),
                preferred_element_type=jnp.float32) + bv_ref[0]       # (S, hd)

    # scores via dot_general (no explicit K transpose), f32 accumulation
    s = jax.lax.dot_general(q.astype(jnp.bfloat16), k.astype(jnp.bfloat16),
                            (((1,), (1,)), ((), ())),
                            preferred_element_type=jnp.float32) * scale  # (T, S)

    # masks generated in-kernel: padding from the (1, S) mask, causal from iota
    allowed = pad_ref[0] > 0.5                    # (1, S) bool
    if causal:
        T, S = s.shape
        qi = jax.lax.broadcasted_iota(jnp.int32, (T, S), 0)
        kj = jax.lax.broadcasted_iota(jnp.int32, (T, S), 1)
        allowed = jnp.logical_and(allowed, kj <= qi)                  # (T, S)
    s = s + jnp.where(allowed, 0.0, NEG_MASK)     # matches (1 - mask) * -10000

    # softmax in f32; reciprocal on the EUP
    m = jnp.max(s, axis=-1, keepdims=True)
    p = jnp.exp(s - m)
    p = p * pl.reciprocal(jnp.sum(p, axis=-1, keepdims=True), approx=True)

    ctx = jnp.dot(p.astype(jnp.bfloat16), v.astype(jnp.bfloat16),
                  preferred_element_type=jnp.float32)                 # (T, hd)
    acc_ref[...] += jnp.dot(ctx.astype(jnp.bfloat16),
                            wo_ref[0].astype(jnp.bfloat16),
                            preferred_element_type=jnp.float32)       # (T, H)

    @pl.when(h == pl.num_programs(1) - 1)
    def _finalize():
        y = acc_ref[...] + bo_ref[...] + x        # out-proj bias + residual
        mu = jnp.mean(y, axis=-1, keepdims=True)
        var = jnp.mean(jnp.square(y - mu), axis=-1, keepdims=True)
        o_ref[0] = (y - mu) * jax.lax.rsqrt(var + eps) * g_ref[...] + beta_ref[...]


def fused_attention(xq, kv, pad, wq, bq, wk, bk, wv, bv, wo, bo, g, beta,
                    nh, *, causal, eps=1e-12):
    B, T, H = xq.shape
    S = kv.shape[1]
    hd = H // nh
    scale = 1.0 / math.sqrt(hd)

    # one-time per-layer weight re-layout into per-head slabs (cheap; lets the
    # head axis be addressed by the BlockSpec index_map instead of XLA
    # activation transposes)
    wq_h = wq.reshape(H, nh, hd).transpose(1, 0, 2)        # (nh, H, hd)
    wk_h = wk.reshape(H, nh, hd).transpose(1, 0, 2)
    wv_h = wv.reshape(H, nh, hd).transpose(1, 0, 2)
    wo_h = wo.reshape(nh, hd, H)                           # (nh, hd, H)
    bq_h = bq.reshape(nh, 1, hd)
    bk_h = bk.reshape(nh, 1, hd)
    bv_h = bv.reshape(nh, 1, hd)

    return pl.pallas_call(
        partial(_fused_attn_kernel, causal=causal, scale=scale, eps=eps),
        out_shape=jax.ShapeDtypeStruct((B, T, H), jnp.float32),
        grid=(B, nh),
        in_specs=[pl.BlockSpec((1, 1, S), lambda b, h: (b, 0, 0)),    # pad mask
                  pl.BlockSpec((1, T, H), lambda b, h: (b, 0, 0)),    # query/residual
                  pl.BlockSpec((1, S, H), lambda b, h: (b, 0, 0)),    # key/value src
                  pl.BlockSpec((1, H, hd), lambda b, h: (h, 0, 0)),   # Wq head slab
                  pl.BlockSpec((1, 1, hd), lambda b, h: (h, 0, 0)),   # bq
                  pl.BlockSpec((1, H, hd), lambda b, h: (h, 0, 0)),   # Wk
                  pl.BlockSpec((1, 1, hd), lambda b, h: (h, 0, 0)),   # bk
                  pl.BlockSpec((1, H, hd), lambda b, h: (h, 0, 0)),   # Wv
                  pl.BlockSpec((1, 1, hd), lambda b, h: (h, 0, 0)),   # bv
                  pl.BlockSpec((1, hd, H), lambda b, h: (h, 0, 0)),   # Wo head slab
                  pl.BlockSpec((1, H), lambda b, h: (0, 0)),          # bo
                  pl.BlockSpec((1, H), lambda b, h: (0, 0)),          # LN gamma
                  pl.BlockSpec((1, H), lambda b, h: (0, 0))],         # LN beta
        out_specs=pl.BlockSpec((1, T, H), lambda b, h: (b, 0, 0)),
        scratch_shapes=[pltpu.VMEM((T, H), jnp.float32)],
        compiler_params=_cparams(("parallel", "arbitrary")),
    )(pad, xq, kv, wq_h, bq_h, wk_h, bk_h, wv_h, bv_h, wo_h,
      bo.reshape(1, H), g.reshape(1, H), beta.reshape(1, H))


def _ffn_kernel(x_ref, wfc_ref, bfc_ref, wpj_ref, bpj_ref, g_ref, b_ref, o_ref,
                *, eps):
    # fused: matmul -> GELU -> matmul -> +bias -> +residual -> LayerNorm
    x = x_ref[...]                                                    # (tm, H) f32
    a = jnp.dot(x.astype(jnp.bfloat16), wfc_ref[...].astype(jnp.bfloat16),
                preferred_element_type=jnp.float32) + bfc_ref[...]
    # TODO(synk): BERT uses the exact erf GELU; tanh approximation used here
    # (difference < 1e-3) to stay on guaranteed-supported Mosaic ops.
    a = 0.5 * a * (1.0 + jnp.tanh(math.sqrt(2.0 / math.pi)
                                  * (a + 0.044715 * a * a * a)))
    y = jnp.dot(a.astype(jnp.bfloat16), wpj_ref[...].astype(jnp.bfloat16),
                preferred_element_type=jnp.float32) + bpj_ref[...] + x
    mu = jnp.mean(y, axis=-1, keepdims=True)
    var = jnp.mean(jnp.square(y - mu), axis=-1, keepdims=True)
    o_ref[...] = (y - mu) * jax.lax.rsqrt(var + eps) * g_ref[...] + b_ref[...]


def ffn(x, wfc, bfc, wpj, bpj, g, b, *, eps=1e-12, tm_target=256):
    B, T, H = x.shape
    M = B * T
    F = wfc.shape[1]
    xf = x.reshape(M, H)
    tm = _pick_tile(M, tm_target, 8)
    out = pl.pallas_call(
        partial(_ffn_kernel, eps=eps),
        out_shape=jax.ShapeDtypeStruct((M, H), jnp.float32),
        grid=(M // tm,),
        in_specs=[pl.BlockSpec((tm, H), lambda i: (i, 0)),
                  pl.BlockSpec((H, F), lambda i: (0, 0)),
                  pl.BlockSpec((1, F), lambda i: (0, 0)),
                  pl.BlockSpec((F, H), lambda i: (0, 0)),
                  pl.BlockSpec((1, H), lambda i: (0, 0)),
                  pl.BlockSpec((1, H), lambda i: (0, 0)),
                  pl.BlockSpec((1, H), lambda i: (0, 0))],
        out_specs=pl.BlockSpec((tm, H), lambda i: (i, 0)),
        compiler_params=_cparams(("parallel",)),
    )(xf, wfc, bfc.reshape(1, F), wpj, bpj.reshape(1, H),
      g.reshape(1, H), b.reshape(1, H))
    return out.reshape(B, T, H)


def _matmul_kernel(x_ref, w_ref, o_ref, acc_ref):
    # tiled matmul, no bias / no residual: f32 VMEM accumulator over K tiles
    @pl.when(pl.program_id(2) == 0)
    def _init():
        acc_ref[...] = jnp.zeros_like(acc_ref)

    acc_ref[...] += jnp.dot(x_ref[...].astype(jnp.bfloat16),
                            w_ref[...].astype(jnp.bfloat16),
                            preferred_element_type=jnp.float32)

    @pl.when(pl.program_id(2) == pl.num_programs(2) - 1)
    def _finalize():
        o_ref[...] = acc_ref[...]


def matmul_nobias(x, w, *, tm_target=256, tn_target=512, tk_target=512):
    M, K = x.shape
    N = w.shape[1]
    tm = _pick_tile(M, tm_target, 8)
    tn = _pick_tile(N, tn_target, 128)
    tk = _pick_tile(K, tk_target, 128)
    return pl.pallas_call(
        _matmul_kernel,
        out_shape=jax.ShapeDtypeStruct((M, N), jnp.float32),
        grid=(M // tm, N // tn, K // tk),
        in_specs=[pl.BlockSpec((tm, tk), lambda i, j, k: (i, k)),
                  pl.BlockSpec((tk, tn), lambda i, j, k: (k, j))],
        out_specs=pl.BlockSpec((tm, tn), lambda i, j, k: (i, j)),
        scratch_shapes=[pltpu.VMEM((tm, tn), jnp.float32)],
        compiler_params=_cparams(("parallel", "parallel", "arbitrary")),
    )(x, w)


# ----------------------------- model forward --------------------------------

def sinusoid_pe(max_len, H):
    position = jnp.arange(max_len, dtype=jnp.float32)[:, None]
    div_term = jnp.exp(jnp.arange(0, H, 2, dtype=jnp.float32)
                       * -(math.log(10000.0) / H))
    pe = jnp.zeros((max_len, H), jnp.float32)
    pe = pe.at[:, 0::2].set(jnp.sin(position * div_term))
    pe = pe.at[:, 1::2].set(jnp.cos(position * div_term))
    return pe


def init_params(key, H, nh, n_layer, vocab, max_pos=64):
    # matmul weights stored in bf16 (halves weight DMA bytes); LN/bias in f32.
    keys = iter(jax.random.split(key, 10 * n_layer + 4))
    nrm = lambda shape: (0.02 * jax.random.normal(next(keys), shape)
                         ).astype(jnp.bfloat16)
    ones = lambda n: jnp.ones((n,), jnp.float32)
    zeros = lambda n: jnp.zeros((n,), jnp.float32)
    F = 4 * H
    layers = []
    for _ in range(n_layer):
        layers.append(dict(
            q_w=nrm((H, H)), q_b=zeros(H),
            k_w=nrm((H, H)), k_b=zeros(H),
            v_w=nrm((H, H)), v_b=zeros(H),
            ao_w=nrm((H, H)), ao_b=zeros(H),
            ln_att_g=ones(H), ln_att_b=zeros(H),
            cq_w=nrm((H, H)), cq_b=zeros(H),
            ck_w=nrm((H, H)), ck_b=zeros(H),
            cv_w=nrm((H, H)), cv_b=zeros(H),
            co_w=nrm((H, H)), co_b=zeros(H),
            ln_cr_g=ones(H), ln_cr_b=zeros(H),
            fc_w=nrm((H, F)), fc_b=zeros(F),
            pj_w=nrm((F, H)), pj_b=zeros(H),
            ln_out_g=ones(H), ln_out_b=zeros(H),
        ))
    return dict(
        num_heads=nh,
        layers=layers,
        w_in=nrm((H, H)),                     # input_layer (Linear, bias=False)
        in_ln_g=ones(H), in_ln_b=zeros(H),    # LayerNorm(eps=1e-6)
        pe=sinusoid_pe(max_pos, H),           # sinusoidal PositionalEncoding table
        w_out=nrm((H, vocab)),                # output_layer (Linear, bias=False)
    )


def bert_decoder_forward(params, trg_embed, encoder_output, src_mask, trg_mask):
    B, T, H = trg_embed.shape
    S = encoder_output.shape[1]
    nh = params["num_heads"]
    V = params["w_out"].shape[1]

    # PE + emb_dropout(identity) + input_layer + LayerNorm(1e-6), fused
    x = embed(trg_embed, params["pe"][:T], params["w_in"],
              params["in_ln_g"], params["in_ln_b"], eps=1e-6)

    # only the (B,1,T)/(B,1,S) padding masks are passed; the causal part and the
    # additive -10000 extension are generated in-kernel
    trg_pad = trg_mask.reshape(B, 1, T).astype(jnp.float32)
    src_pad = src_mask.reshape(B, 1, S).astype(jnp.float32)

    for lp in params["layers"]:
        # BertLayer self-attention (causal + target padding) + add & LN(1e-12)
        x = fused_attention(x, x, trg_pad,
                            lp["q_w"], lp["q_b"], lp["k_w"], lp["k_b"],
                            lp["v_w"], lp["v_b"], lp["ao_w"], lp["ao_b"],
                            lp["ln_att_g"], lp["ln_att_b"], nh, causal=True)
        # BertLayer cross-attention over encoder output + add & LN(1e-12)
        x = fused_attention(x, encoder_output, src_pad,
                            lp["cq_w"], lp["cq_b"], lp["ck_w"], lp["ck_b"],
                            lp["cv_w"], lp["cv_b"], lp["co_w"], lp["co_b"],
                            lp["ln_cr_g"], lp["ln_cr_b"], nh, causal=False)
        # BertIntermediate + BertOutput (GELU FFN) + add & LN(1e-12)
        x = ffn(x, lp["fc_w"], lp["fc_b"], lp["pj_w"], lp["pj_b"],
                lp["ln_out_g"], lp["ln_out_b"])

    logits = matmul_nobias(x.reshape(B * T, H), params["w_out"]).reshape(B, T, V)
    return logits, x, None, None


# --------------------------------- main --------------------------------------

if __name__ == "__main__":
    B, T, S, H, NH, NL, V = 2, 8, 16, 32, 4, 2, 16
    key = jax.random.PRNGKey(0)
    k1, k2, kp = jax.random.split(key, 3)

    trg_embed = jax.random.normal(k1, (B, T, H), jnp.float32)
    encoder_output = jax.random.normal(k2, (B, S, H), jnp.float32)
    trg_mask = jnp.ones((B, 1, T), dtype=bool)
    src_mask = jnp.ones((B, 1, S), dtype=bool).at[1, 0, 13:].set(False)  # pad tail

    params = init_params(kp, H, NH, NL, V)

    logits, hidden, _, _ = bert_decoder_forward(params, trg_embed, encoder_output,
                                                src_mask, trg_mask)
    jax.block_until_ready((logits, hidden))

    assert logits.shape == (B, T, V) and hidden.shape == (B, T, H)
    assert bool(jnp.all(jnp.isfinite(logits))) and bool(jnp.all(jnp.isfinite(hidden)))
    # TODO(synk): dropout layers are identity (eval mode); training-mode dropout
    # and HF pretrained-weight loading are not modeled (random init in-script).
    print("KERNEL_OK")
</pallas_src>

<mosaic_0001>
module attributes {stable_mosaic.version = 11 : i64} {
  func.func @_embed_kernel(%arg0: i32, %arg1: memref<1x8x32xf32, #tpu.memory_space<vmem>>, %arg2: memref<8x32xf32, #tpu.memory_space<vmem>>, %arg3: memref<32x32xbf16, #tpu.memory_space<vmem>>, %arg4: memref<1x32xf32, #tpu.memory_space<vmem>>, %arg5: memref<1x32xf32, #tpu.memory_space<vmem>>, %arg6: memref<1x8x32xf32, #tpu.memory_space<vmem>>) attributes {dimension_semantics = [#tpu.dimension_semantics<parallel>], iteration_bounds = array<i64: 2>, scalar_prefetch = 0 : i64, scratch_operands = 0 : i64, tpu.core_type = #tpu.core_type<tc>, window_params = [{transform_indices = @transform_0, window_bounds = array<i64: 1, 8, 32>}, {pipeline_mode = #tpu.pipeline_mode<synchronous>, transform_indices = @transform_1, window_bounds = array<i64: 8, 32>}, {pipeline_mode = #tpu.pipeline_mode<synchronous>, transform_indices = @transform_2, window_bounds = array<i64: 32, 32>}, {pipeline_mode = #tpu.pipeline_mode<synchronous>, transform_indices = @transform_3, window_bounds = array<i64: 1, 32>}, {pipeline_mode = #tpu.pipeline_mode<synchronous>, transform_indices = @transform_4, window_bounds = array<i64: 1, 32>}, {transform_indices = @transform_5, window_bounds = array<i64: 1, 8, 32>}]} {
    %c0 = arith.constant 0 : index
    %c0_0 = arith.constant 0 : index
    %c0_1 = arith.constant 0 : index
    %0 = vector.load %arg1[%c0, %c0_0, %c0_1] : memref<1x8x32xf32, #tpu.memory_space<vmem>>, vector<1x8x32xf32>
    %1 = vector.shape_cast %0 : vector<1x8x32xf32> to vector<8x32xf32>
    %c0_2 = arith.constant 0 : index
    %c0_3 = arith.constant 0 : index
    %2 = vector.load %arg2[%c0_2, %c0_3] : memref<8x32xf32, #tpu.memory_space<vmem>>, vector<8x32xf32>
    %3 = arith.addf %1, %2 : vector<8x32xf32>
    %4 = arith.truncf %3 : vector<8x32xf32> to vector<8x32xbf16>
    %c0_4 = arith.constant 0 : index
    %c0_5 = arith.constant 0 : index
    %5 = vector.load %arg3[%c0_4, %c0_5] : memref<32x32xbf16, #tpu.memory_space<vmem>>, vector<32x32xbf16>
    %cst = arith.constant dense<0.000000e+00> : vector<8x32xf32>
    %6 = tpu.matmul %4, %5, %cst {dimension_numbers = #tpu.dot_dimension_numbers<[1], [0], [0], [1], [0, 0, 1, 1], [], []>} : vector<8x32xbf16>, vector<32x32xbf16>, vector<8x32xf32> -> vector<8x32xf32>
    %cst_6 = arith.constant dense<0.000000e+00> : vector<8xf32>
    %7 = vector.multi_reduction <add>, %6, %cst_6 [1] : vector<8x32xf32> to vector<8xf32>
    %8 = vector.shape_cast %7 : vector<8xf32> to vector<8x1xf32>
    %cst_7 = arith.constant 3.200000e+01 : f32
    %9 = vector.broadcast %cst_7 : f32 to vector<8x1xf32>
    %10 = arith.divf %8, %9 : vector<8x1xf32>
    %11 = vector.broadcast %10 : vector<8x1xf32> to vector<8x32xf32>
    %12 = arith.subf %6, %11 : vector<8x32xf32>
    %13 = arith.mulf %12, %12 : vector<8x32xf32>
    %cst_8 = arith.constant dense<0.000000e+00> : vector<8xf32>
    %14 = vector.multi_reduction <add>, %13, %cst_8 [1] : vector<8x32xf32> to vector<8xf32>
    %15 = vector.shape_cast %14 : vector<8xf32> to vector<8x1xf32>
    %cst_9 = arith.constant 3.200000e+01 : f32
    %16 = vector.broadcast %cst_9 : f32 to vector<8x1xf32>
    %17 = arith.divf %15, %16 : vector<8x1xf32>
    %18 = vector.broadcast %10 : vector<8x1xf32> to vector<8x32xf32>
    %19 = arith.subf %6, %18 : vector<8x32xf32>
    %cst_10 = arith.constant 9.99999997E-7 : f32
    %20 = vector.broadcast %cst_10 : f32 to vector<8x1xf32>
    %21 = arith.addf %17, %20 : vector<8x1xf32>
    %22 = math.rsqrt %21 : vector<8x1xf32>
    %23 = vector.broadcast %22 : vector<8x1xf32> to vector<8x32xf32>
    %24 = arith.mulf %19, %23 : vector<8x32xf32>
    %c0_11 = arith.constant 0 : index
    %c0_12 = arith.constant 0 : index
    %25 = vector.load %arg4[%c0_11, %c0_12] : memref<1x32xf32, #tpu.memory_space<vmem>>, vector<1x32xf32>
    %26 = vector.broadcast %25 : vector<1x32xf32> to vector<8x32xf32>
    %27 = arith.mulf %24, %26 : vector<8x32xf32>
    %c0_13 = arith.constant 0 : index
    %c0_14 = arith.constant 0 : index
    %28 = vector.load %arg5[%c0_13, %c0_14] : memref<1x32xf32, #tpu.memory_space<vmem>>, vector<1x32xf32>
    %29 = vector.broadcast %28 : vector<1x32xf32> to vector<8x32xf32>
    %30 = arith.addf %27, %29 : vector<8x32xf32>
    %c0_15 = arith.constant 0 : index
    %c0_16 = arith.constant 0 : index
    %c0_17 = arith.constant 0 : index
    %31 = vector.load %arg6[%c0_15, %c0_16, %c0_17] : memref<1x8x32xf32, #tpu.memory_space<vmem>>, vector<1x8x32xf32>
    %32 = vector.shape_cast %31 : vector<1x8x32xf32> to vector<8x32xf32>
    %33 = vector.shape_cast %30 : vector<8x32xf32> to vector<1x8x32xf32>
    tpu.vector_store %arg6[%c0_15, %c0_16, %c0_17], %33 {strides = array<i32>} : memref<1x8x32xf32, #tpu.memory_space<vmem>>, vector<1x8x32xf32>,
    return
  }
  func.func @transform_0(%arg0: i32) -> (i32, i32, i32) {
    %c0_i32 = arith.constant 0 : i32
    %c0_i32_0 = arith.constant 0 : i32
    %c0_i32_1 = arith.constant 0 : i32
    return %arg0, %c0_i32, %c0_i32_0 : i32, i32, i32
  }
  func.func @transform_1(%arg0: i32) -> (i32, i32) {
    %c0_i32 = arith.constant 0 : i32
    %c0_i32_0 = arith.constant 0 : i32
    %c0_i32_1 = arith.constant 0 : i32
    return %c0_i32, %c0_i32_0 : i32, i32
  }
  func.func @transform_2(%arg0: i32) -> (i32, i32) {
    %c0_i32 = arith.constant 0 : i32
    %c0_i32_0 = arith.constant 0 : i32
    %c0_i32_1 = arith.constant 0 : i32
    return %c0_i32, %c0_i32_0 : i32, i32
  }
  func.func @transform_3(%arg0: i32) -> (i32, i32) {
    %c0_i32 = arith.constant 0 : i32
    %c0_i32_0 = arith.constant 0 : i32
    %c0_i32_1 = arith.constant 0 : i32
    return %c0_i32, %c0_i32_0 : i32, i32
  }
  func.func @transform_4(%arg0: i32) -> (i32, i32) {
    %c0_i32 = arith.constant 0 : i32
    %c0_i32_0 = arith.constant 0 : i32
    %c0_i32_1 = arith.constant 0 : i32
    return %c0_i32, %c0_i32_0 : i32, i32
  }
  func.func @transform_5(%arg0: i32) -> (i32, i32, i32) {
    %c0_i32 = arith.constant 0 : i32
    %c0_i32_0 = arith.constant 0 : i32
    %c0_i32_1 = arith.constant 0 : i32
    return %arg0, %c0_i32, %c0_i32_0 : i32, i32, i32
  }
}

</mosaic_0001>

<bundles_post_ra>
// kernel: tpu_custom_call.1
= control target key start
LH: loop header
LB: loop body
LE: loop exit
PB: predicated region body
PF: predicated region fallthrough
CT: control target
= control target key end

     0   :  { %10 = vsyncpa [#allocation3], 0  ;;  %s1005_s0 = inlined_call_operand.hbm [shape: f32[2,8,32], index: 0, kind: input, shape index: {}]   ;;  %s1006_s1 = inlined_call_operand.hbm [shape: f32[8,32], index: 1, kind: input, shape index: {}]   ;;  %s1007_s2 = inlined_call_operand.hbm [shape: bf16[32,32], index: 2, kind: input, shape index: {}]   ;;  %s1008_s3 = inlined_call_operand.vmem [shape: f32[1,32], index: 3, kind: input, shape index: {}]   ;;  %s1009_s4 = inlined_call_operand.vmem [shape: f32[1,32], index: 4, kind: input, shape index: {}]   ;;  %s1010_s5 = inlined_call_operand.hbm [shape: f32[2,8,32], index: 5, kind: output, shape index: {}]  }
   0x1   :  { %12 = vsyncpa [#allocation3 + $0x1], 0 }
   0x2   :  { %13 = vsyncpa [#allocation6], 0 }
   0x3   :  { %14 = vsyncpa [#allocation4], 0 }
   0x4   :  { %16 = vsyncpa [#allocation4 + $0x1], 0  ;;  %s769_s18 = smov 0   ;;  %s771_s19 = smov 0  }
   0x5   :  { %s773_s20 = smov 0   ;;  %s775_s21 = smov 0  }
   0x6 LB: > { %s790_s22 = sadd.s32 4294967295, %s729_s21   ;;  %s466_s23 = sadd.s32 4294967294, %s729_s21   ;;  %s729_s21 = sphi %s775_s21, %s1030_s21   ;;  %s725_s20 = sphi %s773_s20, %s1029_s20   ;;  %s721_s19 = sphi %s771_s19, %s1028_s19   ;;  %s717_s18 = sphi %s769_s18, %s1027_s18  }
   0x7   : > { %p42_p0 = scmp.ne.s32.totalorder %s721_s19, %s717_s18  ;;  %p1011_p1 = scmp.eq.s32.totalorder %s790_s22, 0 }
   0x8   : > { %p156_p3 = scmp.eq.s32.totalorder %s466_s23, 1  ;;  %p467_p5 = scmp.ge.s32.totalorder %s729_s21, 1 }
   0x9   : > { %p799_p4 = por %p1011_p1, %p42_p0  ;;  %p163_p7 = scmp.lt.s32.totalorder %s729_s21, 3 }
   0xa   : > { %p804_p6 = por %p156_p3, %p42_p0  ;;  %s731_s27 = smov [#allocation5]  }
   0xb   : > { %s1014_s24 = scalar_select %p799_p4, 1, 0 }
   0xc   : > { %s1015_s25 = scalar_select %p804_p6, 1, 0 }
   0xd   : > { %p809_p8 = pnand %p467_p5, %p163_p7  ;;  %s176_s28 = sshll.u32 %s731_s27, 4  ;;  %s177_s28 = int_to_ptr.vmem [resolvable:$true] %s176_s28 }
   0xe   : > { %s732_s29 = smov [#allocation7]   ;;  %s573_s9 = scalar_lea.hbm %s1006_s1, 128 }
   0xf   : > { %s1016_s26 = scalar_select %p809_p8, 1, 0 }
  0x10   : > { %p510_p10 = pneg %p809_p8  ;;  %s186_s30 = sshll.u32 %s732_s29, 4  ;;  %s822_s30 = int_to_ptr.vmem [resolvable:$true] %s186_s30 }
  0x11   : > { %p574_p12 = scmp.ne.s32.totalorder %s1006_s1, %s573_s9  ;;  %p580_p5 = scmp.lt.u32.totalorder %s573_s9, %s1006_s1 }
  0x12   : > { %p818_p11 = pnand %p510_p10, %p1011_p1 }
  0x14   : > { %p575_p13 = pneg %p818_p11 }
  0x16   : > { %p576_p0 = pnand %p575_p13, %p574_p12 }
  0x18   : > { %p577_p3 = pneg %p576_p0 }
  0x1a   : > { %p582_p7 = pnand %p580_p5, %p577_p3 }
  0x1c   : > { %585 = shalt.err (!%p582_p7)
}
  0x1d   : > { %s586_s14 = scalar_lea.vmem %s177_s28, 128  ;;  %p594_p2 = scmp.lt.s32.totalorder %s177_s28, %s177_s28 }
  0x1e   : > { %p587_p10 = scmp.ne.s32.totalorder %s177_s28, %s586_s14  ;;  %p595_p6 = scmp.lt.s32.totalorder %s586_s14, %s586_s14 }
  0x20   : > { %p589_p9 = pnand %p587_p10, %p575_p13  ;;  %p596_p4 = por %p595_p6, %p594_p2 }
  0x22   : > { %p590_p1 = pneg %p589_p9 }
  0x24   : > { %p597_p8 = pnand %p596_p4, %p590_p1 }
  0x26   : > { %600 = shalt.err (!%p597_p8)
}
  0x27   : > { %513 = dma.hbm_to_vmem [thread:$0]  (!%p818_p11), %s1006_s1, 128, %s177_s28, [#allocation6]  }
  0x28   : > { %s601_s27 = scalar_lea.hbm %s1007_s2, 256 }
  0x29   : > { %p602_p9 = scmp.ne.s32.totalorder %s1007_s2, %s601_s27  ;;  %p608_p4 = scmp.lt.u32.totalorder %s601_s27, %s1007_s2 }
  0x2b   : > { %p604_p2 = pnand %p602_p9, %p575_p13 }
  0x2d   : > { %p605_p1 = pneg %p604_p2 }
  0x2f   : > { %p610_p6 = pnand %p608_p4, %p605_p1 }
  0x31   : > { %613 = shalt.err (!%p610_p6)
}
  0x32   : > { %s614_s28 = scalar_lea.vmem %s822_s30, 256  ;;  %p622_p3 = scmp.lt.s32.totalorder %s822_s30, %s822_s30 }
  0x33   : > { %p615_p8 = scmp.ne.s32.totalorder %s822_s30, %s614_s28  ;;  %p623_p5 = scmp.lt.s32.totalorder %s614_s28, %s614_s28 }
  0x35   : > { %p617_p12 = pnand %p615_p8, %p575_p13  ;;  %p624_p7 = por %p623_p5, %p622_p3 }
  0x37   : > { %p618_p0 = pneg %p617_p12 }
  0x39   : > { %p625_p10 = pnand %p624_p7, %p618_p0 }
  0x3b   : > { %628 = shalt.err (!%p625_p10)
}
  0x3c   : > { %s733_s10 = smov 64   ;;  %s734_s11 = smov 4  }
  0x3d   : > { %516 = dma.hbm_to_vmem [thread:$0]  (!%p818_p11), %s1007_s2, 256, %s822_s30, [#allocation6], %s733_s10, %s733_s10, %s734_s11  }
  0x3e   : > { %s872_s14 = sadd.s32 1, %s729_s21   ;;  %s29_s15 = sadd.s32 1, %s725_s20 }
  0x3f   : > { %s26_s16 = ssub.s32 %s729_s21, %s872_s14  ;;  %p36_p13 = scmp.ne.s32.totalorder %s725_s20, %s721_s19 }
  0x40   : > { %p27_p9 = scmp.eq.s32.totalorder %s26_s16, 0  ;;  %p37_p2 = scmp.eq.s32.totalorder %s729_s21, 0 }
  0x41   : > { %p1018_p1 = scmp.eq.s32.totalorder %s790_s22, 1  ;;  %p527_p6 = scmp.lt.s32.totalorder %s729_s21, 2 }
  0x42   : > { %s888_s23 = scalar_select %p27_p9, %s725_s20, %s29_s15  }
  0x43   : > { %p882_p4 = por %p1018_p1, %p36_p13  ;;  %p38_p8 = por %p37_p2, %p36_p13 }
  0x44   : > { %s206_s6 = sand.u32 1, %s725_s20   ;;  %s472_s30 = sshll.u32 %s729_s21, 7 }
  0x45   : > { %s471_s27 = sshll.u32 %s206_s6, 3  ;;  %s895_s8 = scalar_lea.hbm %s1005_s0, %s472_s30 }
  0x46   : > { %s210_s9 = scalar_lea.vmem [#allocation2], %s471_s27  ;;  %p899_p11 = pnand %p527_p6, %p38_p8 }
  0x47   : > { %s217_s28 = sshll.u32 %s210_s9, 4  ;;  %s207_s11 = scalar_lea.sflag [#allocation3], %s206_s6  ;;  %s897_s28 = int_to_ptr.vmem [resolvable:$true] %s217_s28 }
  0x48   : > { %s629_s12 = scalar_lea.hbm %s895_s8, 128  ;;  %p631_p0 = pneg %p899_p11 }
  0x49   : > { %p630_p12 = scmp.ne.s32.totalorder %s895_s8, %s629_s12  ;;  %s634_s16 = scalar_lea.hbm %s1005_s0, 256 }
  0x4a   : > { %p635_p7 = scmp.lt.u32.totalorder %s895_s8, %s1005_s0  ;;  %p636_p10 = scmp.lt.u32.totalorder %s634_s16, %s629_s12 }
  0x4b   : > { %p632_p3 = pnand %p631_p0, %p630_p12  ;;  %p638_p9 = scmp.lt.u32.totalorder %s629_s12, %s895_s8 }
  0x4c   : > { %p637_p13 = por %p636_p10, %p635_p7 }
  0x4d   : > { %p633_p5 = pneg %p632_p3 }
  0x4e   : > { %p639_p2 = por %p638_p9, %p637_p13 }
  0x50   : > { %p640_p1 = pnand %p639_p2, %p633_p5 }
  0x52   : > { %643 = shalt.err (!%p640_p1)
}
  0x53   : > { %s644_s6 = scalar_lea.vmem %s897_s28, 128  ;;  %s735_s29 = smov [#allocation2]  }
  0x54   : > { %p645_p6 = scmp.ne.s32.totalorder %s897_s28, %s644_s6  ;;  %s649_s7 = sshll.u32 %s735_s29, 4  ;;  %s650_s7 = int_to_ptr.vmem [resolvable:$false] %s649_s7 }
  0x55   : > { %s651_s9 = scalar_lea.vmem %s650_s7, 256  ;;  %p652_p3 = scmp.lt.s32.totalorder %s897_s28, %s650_s7 }
  0x56   : > { %p647_p8 = pnand %p645_p6, %p631_p0  ;;  %p653_p7 = scmp.lt.s32.totalorder %s651_s9, %s644_s6 }
  0x58   : > { %p648_p12 = pneg %p647_p8  ;;  %p654_p10 = por %p653_p7, %p652_p3 }
  0x5a   : > { %p655_p13 = pnand %p654_p10, %p648_p12 }
  0x5c   : > { %658 = shalt.err (!%p655_p13)
}
  0x5d   : > { %520 = dma.hbm_to_vmem [thread:$0]  (!%p899_p11), %s895_s8, 128, %s897_s28, %s207_s11  }
  0x5e   : > { %p1021_p5 = scmp.ne.s32.totalorder %s1016_s26, 0 }
  0x5f   : > { %s931_s12 = sand.u32 (!%p1021_p5), 1, %s721_s19   ;;  %p1022_p0 = scmp.ne.s32.totalorder (!%p1021_p5), %s1014_s24, 0 }
  0x60   : > { %226 = sbr.rel (%p1021_p5) target bundleno = 655 (0x28f), region = 40  ;;  %s474_s13 = sshll.u32 (!%p1021_p5), %s931_s12, 3 }
  0x61   : > { %s229_s15 = scalar_lea.sflag (!%p1021_p5), [#allocation3], %s931_s12  ;;  %s232_s16 = scalar_lea.vmem (!%p1021_p5), [#allocation2], %s474_s13 }
  0x67   : > { %704 = dma.done.wait (%p1022_p0), %s229_s15, 128  }
  0x68   : > { %706 = vsyncadd (%p1022_p0), %s229_s15, 4294967168  ;;  %p1023_p11 = scmp.eq.s32.totalorder %s790_s22, 0 }
  0x6a   : > { %708 = dma.done.wait (%p1023_p11), [#allocation6], 384   ;;  %p1024_p9 = pmov %p1023_p11 }
  0x6b   : > { %v736_v0 = vmov 0.0   ;;  %vm737_vm0 = vmmov 0   ;;  %v569_v1 = vld [vmem:[#allocation7] sm:$0xff]   ;;  %v570_v2 = vld [vmem:[#allocation7 + $0x8] sm:$0xff]   ;;  %v269_v4 = vld [vmem:[#allocation5] sm:$0xff]  ;;  %vm288_vm1 = vcmask 261120  }
  0x6c   : > { %710 = vsyncadd (%p1024_p9), [#allocation6], 4294966912  ;;  %490 = vmatprep.subr.bf16.mxu0 %v736_v0  ;;  %494 = vmatprep.mubr.msk.bf16.mxu0 %vm737_vm0, %v736_v0  ;;  %v268_v3 = vld [vmem:[%s232_s16] sm:$0xff]  ;;  %s484_s10 = sshll.u32 %s790_s22, 7  ;;  %s266_s11 = scalar_lea.vmem [#allocation8], %s474_s13 }
  0x6d   : > { %491 = vmatpush3.bf16.msra.mxu0 %v569_v1  ;;  %v270_v5 = vadd.f32 %v269_v4, %v268_v3  ;;  %v481_v21 = vld [vmem:[%s1008_s3] ss:$0 sm:$0xff]  ;;  %s377_s27 = sshll.u32 %s266_s11, 4  ;;  %s960_s29 = scalar_lea.hbm %s1010_s5, %s484_s10  ;;  %s962_s27 = int_to_ptr.vmem [resolvable:$true] %s377_s27 }
  0x6e   : > { %492 = vmatprep.subr.bf16.mxu0 %v736_v0  ;;  %v482_v23 = vld [vmem:[%s1009_s4] ss:$0 sm:$0xff]  ;;  %s364_s7 = scalar_lea.sflag [#allocation4], %s931_s12  ;;  %s659_s9 = scalar_lea.vmem %s962_s27, 128 }
  0x6f   : > { %v271_v6 = vpack.c.bf16 %v270_v5, %v270_v5  ;;  %p660_p2 = scmp.ne.s32.totalorder %s962_s27, %s659_s9  ;;  %s738_s22 = smov [#allocation8]  }
  0x70   : > { %s663_s13 = sshll.u32 %s738_s22, 4  ;;  %s664_s13 = int_to_ptr.vmem [resolvable:$false] %s663_s13 }
  0x71   : > { %493 = vmatpush3.bf16.msra.mxu0 %v570_v2  ;;  %p661_p1 = pnand %p660_p2, %p882_p4  ;;  %s665_s15 = scalar_lea.vmem %s664_s13, 256 }
  0x72   : > { %p666_p8 = scmp.lt.s32.totalorder %s962_s27, %s664_s13  ;;  %p667_p12 = scmp.lt.s32.totalorder %s665_s15, %s659_s9 }
  0x73   : > { %p662_p6 = pneg %p661_p1 }
  0x74   : > { %495 = vmatmul.mubr.msk.bf16.vlgmr.msra.gmra.mrb[0].mxu0 %vm288_vm1, %v271_v6  ;;  %p668_p3 = por %p667_p12, %p666_p8 }
  0x76   : > { %p669_p7 = pnand %p668_p3, %p662_p6 }
 0x147   : > { %v326_v7 = vpop.f32.mrb[0].mxu0 }
 0x148   : > { %v496_v8 = vpop.f32.mrb[1].mxu0  ;;  %v332_v9 = vsel %vm288_vm1, %v326_v7, 0.0 }
 0x149   : > { %333 = vadd.xlane.f32.xlu0 %v332_v9  ;;  %v329_v10 = vpop.f32.mrb[2].mxu0 }
 0x14a   : > { %v497_v11 = vpop.f32.mrb[3].mxu0 }
 0x1d6   : > { %v334_v12 = vpop.xlane.xlu0 %333 }
 0x1d7   : > { %v336_v13 = vmul.f32 0.03125, %v334_v12 }
 0x1d9   : > { %v337_v14 = vsub.f32 %v326_v7, %v336_v13 }
 0x1db   : > { %v338_v15 = vmul.f32 %v337_v14, %v337_v14 }
 0x1dd   : > { %v339_v16 = vsel %vm288_vm1, %v338_v15, 0.0 }
 0x1de   : > { %340 = vadd.xlane.f32.xlu0 %v339_v16 }
 0x26b   : > { %v341_v17 = vpop.xlane.xlu0 %340 }
 0x26c   : > { %v342_v18 = vmul.f32 0.03125, %v341_v17 }
 0x26e   : > { %v343_v19 = vadd.f32 1e-06, %v342_v18 }
 0x270   : > { %571 = vrsqrt.f32 %v343_v19 }
 0x27a   : > { %v572_v20 = vpop.eup %571 }
 0x27b   : > { %v345_v22 = vmul.f32 %v572_v20, %v337_v14 }
 0x27d   : > { %v353_v24 = vmul.f32 %v481_v21, %v345_v22 }
 0x27f   : > { %v361_v25 = vadd.f32 %v482_v23, %v353_v24 }
 0x281   : > { %362 = vst.msk [vmem:[%s266_s11] sm:$0xff] %vm288_vm1, %v361_v25 }
 0x282   : > { %672 = shalt.err (!%p669_p7)
}
 0x283   : > { %s673_s12 = scalar_lea.hbm %s960_s29, 128  ;;  %s677_s26 = scalar_lea.hbm %s1010_s5, 256 }
 0x284   : > { %p674_p10 = scmp.ne.s32.totalorder %s960_s29, %s673_s12  ;;  %p678_p0 = scmp.lt.u32.totalorder %s960_s29, %s1010_s5 }
 0x285   : > { %p679_p11 = scmp.lt.u32.totalorder %s677_s26, %s673_s12  ;;  %p681_p2 = scmp.lt.u32.totalorder %s673_s12, %s960_s29 }
 0x286   : > { %p675_p13 = pnand %p674_p10, %p882_p4 }
 0x287   : > { %p680_p9 = por %p679_p11, %p678_p0 }
 0x288   : > { %p676_p5 = pneg %p675_p13 }
 0x289   : > { %p682_p1 = por %p681_p2, %p680_p9 }
 0x28b   : > { %p683_p6 = pnand %p682_p1, %p676_p5 }
 0x28d   : > { %686 = shalt.err (!%p683_p6)
}
 0x28e   : > { %508 = dma.vmem_to_hbm [thread:$0]  (%p882_p4), %s962_s27, 128, %s960_s29, %s364_s7  }
 0x28f PF: > { %s389_s10 = sand.u32 1, %s717_s18   ;;  %p1025_p8 = scmp.ne.s32.totalorder %s1015_s25, 0 }
 0x290   : > { %p1026_p12 = scmp.ge.s32.totalorder %s729_s21, 2  ;;  %s390_s11 = scalar_lea.sflag [#allocation4], %s389_s10 }
 0x292   : > { %p522_p3 = pnand %p1026_p12, %p1025_p8 }
 0x294   : > { %712 = dma.done.wait (!%p522_p3), %s390_s11, 128  }
 0x295   : > { %714 = vsyncadd (!%p522_p3), %s390_s11, 4294967168  ;;  %p19_p7 = scmp.ge.s32.totalorder %s872_s14, 4   ;;  %s1027_s18 = smov %s721_s19 }
 0x296   : > { %s1028_s19 = smov %s725_s20  ;;  %s1029_s20 = smov %s888_s23 }
 0x297   : > { %s1030_s21 = smov %s872_s14  ;;  %21 = sbr.rel (!%p19_p7) target bundleno = 6 (0x6), region = 93 }
 0x29e   :  { %395 = vsyncpa [#allocation3], 1 }
 0x29f   :  { %397 = vsyncpa [#allocation3 + $0x1], 1 }
 0x2a0   :  { %398 = vsyncpa [#allocation6], 1 }
 0x2a1   :  { %399 = vsyncpa [#allocation4], 1 }
 0x2a2   :  { %401 = vsyncpa [#allocation4 + $0x1], 1 }

</bundles_post_ra>
